<compile_context>
chip_gen: v7x
topology: tpu7x:2x2x1
jax: 0.10.0
libtpu: 0.0.40
codegen_flags: <defaults>
</compile_context>

<pallas_src>
import functools

import jax
import jax.numpy as jnp
from jax.experimental import pallas as pl
from jax.experimental.pallas import tpu as pltpu


def _l_color_kernel(x_ref, o_ref, acc_ref, *, hw, tw, masked):
    # x_ref:   (bt, 3, tw) input tile (storage dtype), lane axis = flattened H*W.
    # o_ref:   (bt, 1) output, written only on the last spatial step.
    # acc_ref: (bt, 3) f32 running per-channel sums.
    k = pl.program_id(1)

    @pl.when(k == 0)
    def _():
        acc_ref[...] = jnp.zeros_like(acc_ref)

    x = x_ref[...].astype(jnp.float32)
    if masked:
        # Ragged last spatial tile: zero out lanes past the true H*W extent so the
        # padded region never enters the sum.
        idx = jax.lax.broadcasted_iota(jnp.int32, x.shape, dimension=2)
        x = jnp.where(idx < (hw - k * tw), x, 0.0)

    acc_ref[...] += jnp.sum(x, axis=-1)  # (bt, 3) partial per-channel sums

    @pl.when(k == pl.num_programs(1) - 1)
    def _():
        m = acc_ref[...] * (1.0 / hw)            # per-channel spatial means (bt, 3)
        mr = m[:, 0:1]
        mg = m[:, 1:2]
        mb = m[:, 2:3]
        drg = (mr - mg) ** 2
        drb = (mr - mb) ** 2
        dgb = (mb - mg) ** 2
        o_ref[...] = jnp.sqrt(drg * drg + drb * drb + dgb * dgb).astype(o_ref.dtype)


# 256K lanes -> 3 MB/f32 block, 6 MB double-buffered: fits the default scoped VMEM
# on v5e (16 MiB), v6e (32 MiB) and v7x (32 MiB) with headroom, while keeping the
# ~0.35us/step grid overhead <~15% of per-step DMA time at HBM roofline.
_MAX_TW = 256 * 1024
# Pack small images per grid step until each DMA is ~2 MB.
_TARGET_DMA_BYTES = 2 * 1024 * 1024


def _choose_tiles(b, hw, itemsize):
    # Spatial tile: full extent when it fits (always layout-legal), else a big
    # 128-aligned tile with the ragged tail masked in-kernel.
    tw = hw if hw <= _MAX_TW else _MAX_TW

    per_image = 3 * tw * itemsize
    if per_image >= _TARGET_DMA_BYTES or b == 1:
        return 1, tw
    want = max(1, _TARGET_DMA_BYTES // per_image)
    if want >= b:
        return b, tw                      # whole batch per step (always legal)
    bt = (min(want, b) // 8) * 8          # keep the (bt, 1) output block sublane-legal
    return (bt if bt >= 8 else 1), tw


def l_color(x):
    """Pallas implementation of L_color.forward. x: (B, 3, H, W) -> (B, 1, 1, 1)."""
    b, c, h, w = x.shape
    assert c == 3, "L_color expects 3 channels (RGB)"
    hw = h * w

    # Lane-dense layout: flatten spatial dims (free, contiguous reshape) so H*W
    # sits on the 128-lane axis.
    xf = x.reshape(b, c, hw)

    bt, tw = _choose_tiles(b, hw, xf.dtype.itemsize)
    nb = pl.cdiv(b, bt)
    ns = pl.cdiv(hw, tw)
    masked = (ns * tw) != hw

    kernel = functools.partial(_l_color_kernel, hw=hw, tw=tw, masked=masked)

    out2d = pl.pallas_call(
        kernel,
        out_shape=jax.ShapeDtypeStruct((b, 1), x.dtype),
        grid_spec=pltpu.PrefetchScalarGridSpec(
            num_scalar_prefetch=0,
            grid=(nb, ns),  # batch blocks (parallel), spatial reduction (arbitrary, last)
            in_specs=[pl.BlockSpec((bt, c, tw), lambda i, k: (i, 0, k))],
            out_specs=pl.BlockSpec((bt, 1), lambda i, k: (i, 0)),
            scratch_shapes=[pltpu.VMEM((bt, 3), jnp.float32)],
        ),
        compiler_params=pltpu.CompilerParams(
            dimension_semantics=("parallel", "arbitrary")),
    )(xf)

    # Glue reshape to match PyTorch's (B, 1, 1, 1) keepdim output.
    return out2d.reshape(b, 1, 1, 1)


def _l_color_ref(x):
    """Pure-JAX reference mirroring the PyTorch module."""
    mean_rgb = jnp.mean(x, axis=(2, 3), keepdims=True)          # (B, 3, 1, 1)
    mr = mean_rgb[:, 0:1]
    mg = mean_rgb[:, 1:2]
    mb = mean_rgb[:, 2:3]
    drg = (mr - mg) ** 2
    drb = (mr - mb) ** 2
    dgb = (mb - mg) ** 2
    return jnp.sqrt(drg ** 2 + drb ** 2 + dgb ** 2)              # (B, 1, 1, 1)


if __name__ == "__main__":
    key = jax.random.PRNGKey(0)
    k1, k2 = jax.random.split(key)

    # Small, module-consistent shapes: batch=2, channels=3 (RGB), spatial=16.
    x = jax.random.uniform(k1, (2, 3, 16, 16), dtype=jnp.float32)
    out = jax.block_until_ready(l_color(x))
    ref = _l_color_ref(x)
    assert out.shape == (2, 1, 1, 1)
    assert jnp.allclose(out, ref, atol=1e-6, rtol=1e-5)

    # Second case: batch packing (bt = B) with a non-128-multiple spatial extent.
    x2 = jax.random.uniform(k2, (4, 3, 20, 17), dtype=jnp.float32)
    out2 = jax.block_until_ready(l_color(x2))
    ref2 = _l_color_ref(x2)
    assert out2.shape == (4, 1, 1, 1)
    assert jnp.allclose(out2, ref2, atol=1e-6, rtol=1e-5)

    print("KERNEL_OK")
</pallas_src>

<mosaic_0001>
module attributes {stable_mosaic.version = 11 : i64} {
  func.func @_l_color_kernel(%arg0: i32, %arg1: i32, %arg2: memref<2x3x256xf32, #tpu.memory_space<vmem>>, %arg3: memref<2x1xf32, #tpu.memory_space<vmem>>, %arg4: memref<2x3xf32, #tpu.memory_space<vmem>>) attributes {dimension_semantics = [#tpu.dimension_semantics<parallel>, #tpu.dimension_semantics<arbitrary>], iteration_bounds = array<i64: 1, 1>, scalar_prefetch = 0 : i64, scratch_operands = 1 : i64, tpu.core_type = #tpu.core_type<tc>, window_params = [{transform_indices = @transform_0, window_bounds = array<i64: 2, 3, 256>}, {transform_indices = @transform_1, window_bounds = array<i64: 2, 1>}]} {
    %c0_i32 = arith.constant 0 : i32
    %0 = arith.cmpi eq, %arg1, %c0_i32 : i32
    %1 = arith.extui %0 : i1 to i32
    %c0_i32_0 = arith.constant 0 : i32
    %2 = arith.cmpi ne, %1, %c0_i32_0 : i32
    scf.if %2 {
      %cst_9 = arith.constant 0.000000e+00 : f32
      %11 = vector.broadcast %cst_9 : f32 to vector<2x3xf32>
      %c0_10 = arith.constant 0 : index
      %c0_11 = arith.constant 0 : index
      %12 = vector.load %arg4[%c0_10, %c0_11] : memref<2x3xf32, #tpu.memory_space<vmem>>, vector<2x3xf32>
      tpu.vector_store %arg4[%c0_10, %c0_11], %11 {strides = array<i32>} : memref<2x3xf32, #tpu.memory_space<vmem>>, vector<2x3xf32>,
    } else {
    }
    %c0 = arith.constant 0 : index
    %c0_1 = arith.constant 0 : index
    %c0_2 = arith.constant 0 : index
    %3 = vector.load %arg2[%c0, %c0_1, %c0_2] : memref<2x3x256xf32, #tpu.memory_space<vmem>>, vector<2x3x256xf32>
    %c0_3 = arith.constant 0 : index
    %c0_4 = arith.constant 0 : index
    %4 = vector.load %arg4[%c0_3, %c0_4] : memref<2x3xf32, #tpu.memory_space<vmem>>, vector<2x3xf32>
    %cst = arith.constant dense<0.000000e+00> : vector<2x3xf32>
    %5 = vector.multi_reduction <add>, %3, %cst [2] : vector<2x3x256xf32> to vector<2x3xf32>
    %6 = arith.addf %4, %5 : vector<2x3xf32>
    %c0_5 = arith.constant 0 : index
    %c0_6 = arith.constant 0 : index
    %7 = vector.load %arg4[%c0_5, %c0_6] : memref<2x3xf32, #tpu.memory_space<vmem>>, vector<2x3xf32>
    tpu.vector_store %arg4[%c0_5, %c0_6], %6 {strides = array<i32>} : memref<2x3xf32, #tpu.memory_space<vmem>>, vector<2x3xf32>,
    %c0_i32_7 = arith.constant 0 : i32
    %8 = arith.cmpi eq, %arg1, %c0_i32_7 : i32
    %9 = arith.extui %8 : i1 to i32
    %c0_i32_8 = arith.constant 0 : i32
    %10 = arith.cmpi ne, %9, %c0_i32_8 : i32
    scf.if %10 {
      %c0_9 = arith.constant 0 : index
      %c0_10 = arith.constant 0 : index
      %11 = vector.load %arg4[%c0_9, %c0_10] : memref<2x3xf32, #tpu.memory_space<vmem>>, vector<2x3xf32>
      %cst_11 = arith.constant 3.906250e-03 : f32
      %12 = vector.broadcast %cst_11 : f32 to vector<2x3xf32>
      %13 = arith.mulf %11, %12 : vector<2x3xf32>
      %14 = vector.extract_strided_slice %13 {offsets = [0, 0], sizes = [2, 1], strides = [1, 1]} : vector<2x3xf32> to vector<2x1xf32>
      %15 = vector.extract_strided_slice %13 {offsets = [0, 1], sizes = [2, 1], strides = [1, 1]} : vector<2x3xf32> to vector<2x1xf32>
      %16 = vector.extract_strided_slice %13 {offsets = [0, 2], sizes = [2, 1], strides = [1, 1]} : vector<2x3xf32> to vector<2x1xf32>
      %17 = arith.subf %14, %15 : vector<2x1xf32>
      %18 = arith.mulf %17, %17 : vector<2x1xf32>
      %19 = arith.subf %14, %16 : vector<2x1xf32>
      %20 = arith.mulf %19, %19 : vector<2x1xf32>
      %21 = arith.subf %16, %15 : vector<2x1xf32>
      %22 = arith.mulf %21, %21 : vector<2x1xf32>
      %23 = arith.mulf %18, %18 : vector<2x1xf32>
      %24 = arith.mulf %20, %20 : vector<2x1xf32>
      %25 = arith.addf %23, %24 : vector<2x1xf32>
      %26 = arith.mulf %22, %22 : vector<2x1xf32>
      %27 = arith.addf %25, %26 : vector<2x1xf32>
      %28 = math.sqrt %27 : vector<2x1xf32>
      %c0_12 = arith.constant 0 : index
      %c0_13 = arith.constant 0 : index
      %29 = vector.load %arg3[%c0_12, %c0_13] : memref<2x1xf32, #tpu.memory_space<vmem>>, vector<2x1xf32>
      tpu.vector_store %arg3[%c0_12, %c0_13], %28 {strides = array<i32>} : memref<2x1xf32, #tpu.memory_space<vmem>>, vector<2x1xf32>,
    } else {
    }
    return
  }
  func.func @transform_0(%arg0: i32, %arg1: i32) -> (i32, i32, i32) {
    %c0_i32 = arith.constant 0 : i32
    %c0_i32_0 = arith.constant 0 : i32
    return %arg0, %c0_i32, %arg1 : i32, i32, i32
  }
  func.func @transform_1(%arg0: i32, %arg1: i32) -> (i32, i32) {
    %c0_i32 = arith.constant 0 : i32
    %c0_i32_0 = arith.constant 0 : i32
    return %arg0, %c0_i32 : i32, i32
  }
}

</mosaic_0001>

<bundles_post_ra>
// kernel: tpu_custom_call.1
= control target key start
LH: loop header
LB: loop body
LE: loop exit
PB: predicated region body
PF: predicated region fallthrough
CT: control target
= control target key end

     0   :  { %vm23_vm0 = vcmask 1042432   ;;  %vm12_vm1 = vcmask 17408   ;;  %v103_v10 = vmov 0.0   ;;  %v36_v11 = vlaneseq  ;;  %s105_s10 = smov 1   ;;  %s106_s11 = smov 127   ;;  %s126_s0 = inlined_call_operand.vmem [shape: f32[2,3,256], index: 0, kind: input, shape index: {}]   ;;  %s127_s1 = inlined_call_operand.vmem [shape: f32[2,1], index: 1, kind: output, shape index: {}]  }
   0x1   :  { %v14_v0 = vld [vmem:[%s126_s0] sm:$0x77]  ;;  %v15_v1 = vld [vmem:[%s126_s0 + $0x8] sm:$0x77]  ;;  %13 = vst.msk [vmem:[#allocation2] sm:$0x3] %vm12_vm1, %v103_v10 }
   0x2   :  { %v19_v2 = vcombine.high %v14_v0, %v14_v0  ;;  %v24_v3 = vsel %vm23_vm0, %v14_v0, 0.0  ;;  %v20_v4 = vcombine.high %v15_v1, %v15_v1  ;;  %v29_v6 = vsel %vm23_vm0, %v15_v1, 0.0  ;;  %s104_s0 = smov 126  }
   0x3   :  { %v37_v12 = vand.u32 127, %v36_v11  ;;  %v39_v13 = vshrl.u32 %v36_v11, 7  ;;  %vm46_vm2 = vcmask 1041409   ;;  %vm89_vm3 = vcmask 1024  }
   0x4   :  { %v25_v5 = vsel %vm23_vm0, %v19_v2, 0.0  ;;  %v30_v7 = vsel %vm23_vm0, %v20_v4, 0.0 }
   0x5   :  { %v26_v8 = vadd.f32 %v25_v5, %v24_v3  ;;  %v31_v9 = vadd.f32 %v30_v7, %v29_v6  ;;  %v40_v15 = vsub.s32 %v37_v12, %v39_v13 }
   0x7   :  { %27 = vadd.xlane.f32.xlu0 %v26_v8 }
   0x8   :  { %v16_v18 = vld [vmem:[#allocation2] sm:$0x3] }
   0xb   :  { %32 = vadd.xlane.f32.xlu0 %v31_v9 }
  0x94   :  { %v28_v14 = vpop.xlane.xlu0 %27 }
  0x95   :  { %v41_v17 = vrot.slane %v28_v14, %v40_v15 }
  0x98   :  { %v33_v16 = vpop.xlane.xlu0 %32 }
  0x99   :  { %v45_v19 = vrot.slane %v33_v16, %v40_v15 }
  0x9b   :  { %v47_v20 = vsel %vm46_vm2, %v45_v19, %v41_v17 }
  0x9c   :  { %v49_v21 = vadd.f32 %v47_v20, %v16_v18 }
  0x9e   :  { %51 = vst.msk [vmem:[#allocation2] sm:$0x3] %vm12_vm1, %v49_v21 }
  0xa5   :  { %v55_v22 = vld [vmem:[#allocation2] sm:$0x3] }
  0xa6   :  { %v56_v23 = vmul.f32 0.00390625, %v55_v22 }
  0xa8   :  { %63 = vrot.lane.b32.xlu0 %v56_v23, %s104_s0  ;;  %68 = vrot.lane.b32.xlu1 %v56_v23, %s105_s10 }
  0xac   :  { %58 = vrot.lane.b32.xlu1 %v56_v23, %s106_s11 }
 0x11a   :  { %v69_v24 = vpop.permute.xlu1 %68  ;;  %v64_v29 = vpop.permute.xlu0 %63 }
 0x11b   :  { %v71_v25 = vsub.f32 %v56_v23, %v69_v24  ;;  %v66_v31 = vsub.f32 %v56_v23, %v64_v29 }
 0x11d   :  { %v72_v26 = vmul.f32 %v71_v25, %v71_v25  ;;  %v67_v33 = vmul.f32 %v66_v31, %v66_v31 }
 0x11e   :  { %v59_v28 = vpop.permute.xlu1 %58 }
 0x11f   :  { %v76_v27 = vmul.f32 %v72_v26, %v72_v26  ;;  %v61_v30 = vsub.f32 %v56_v23, %v59_v28  ;;  %v74_v35 = vmul.f32 %v67_v33, %v67_v33 }
 0x121   :  { %78 = vrot.lane.b32.xlu1 %v76_v27, %s104_s0  ;;  %v62_v32 = vmul.f32 %v61_v30, %v61_v30 }
 0x123   :  { %v73_v34 = vmul.f32 %v62_v32, %v62_v32 }
 0x125   :  { %v75_v36 = vadd.f32 %v74_v35, %v73_v34 }
 0x193   :  { %v79_v37 = vpop.permute.xlu1 %78 }
 0x194   :  { %v81_v38 = vadd.f32 %v79_v37, %v75_v36 }
 0x196   :  { %101 = vrsqrt.f32 %v81_v38  ;;  %vm84_vm4 = vcmp.eq.f32.partialorder %v81_v38, inf  ;;  %v87_v41 = vand.u32 2147483648, %v81_v38  ;;  %vm86_vm5 = vcmp.eq.f32.partialorder %v81_v38, 0.0 }
 0x1a0   :  { %v102_v39 = vpop.eup %101 }
 0x1a1   :  { %v83_v40 = vmul.f32 %v102_v39, %v81_v38 }
 0x1a3   :  { %v85_v42 = vsel %vm84_vm4, %v81_v38, %v83_v40 }
 0x1a4   :  { %v88_v43 = vsel %vm86_vm5, %v87_v41, %v85_v42 }
 0x1a5   :  { %90 = vst.msk [vmem:[%s127_s1] sm:$0x3] %vm89_vm3, %v88_v43 }

</bundles_post_ra>
